<compile_context>
chip_gen: v7x
topology: tpu7x:2x2x1
jax: 0.10.0
libtpu: 0.0.40
codegen_flags: <defaults>
</compile_context>

<pallas_src>
import math
from functools import lru_cache, partial

import jax
import jax.numpy as jnp
from jax import lax
from jax.experimental import pallas as pl
from jax.experimental.pallas import tpu as pltpu

NEG_INF = -1e30


# ---------------------------------------------------------------- helpers

def _probe_copy_kernel(x_ref, o_ref):
    o_ref[...] = x_ref[...]


@lru_cache(maxsize=None)
def _single_buffer_supported() -> bool:
    """Probe whether this jax build accepts pipeline_mode=pl.Buffered(1)."""
    try:
        spec = pl.BlockSpec((8, 128), lambda i: (0, 0), pipeline_mode=pl.Buffered(1))
        fn = pl.pallas_call(
            _probe_copy_kernel,
            out_shape=jax.ShapeDtypeStruct((8, 128), jnp.float32),
            grid=(1,),
            in_specs=[spec],
            out_specs=pl.BlockSpec((8, 128), lambda i: (0, 0)),
        )
        jax.block_until_ready(fn(jnp.zeros((8, 128), jnp.float32)))
        return True
    except Exception:
        return False


def _const_spec(shape):
    """BlockSpec for a grid-invariant (weight) operand.

    Single-buffered when supported: constant index map means the block never
    changes, so the second pipeline buffer is pure wasted VMEM.
    """
    zeros = (0,) * len(shape)
    index_map = lambda *_args, _z=zeros: _z
    if _single_buffer_supported():
        return pl.BlockSpec(shape, index_map, pipeline_mode=pl.Buffered(1))
    return pl.BlockSpec(shape, index_map)


@lru_cache(maxsize=None)
def _vmem_cap_bytes() -> int:
    """75% of the chip's VMEM (headroom for Mosaic scratch / semaphores).
    Falls back to a v7x-safe 48 MiB budget if the query is unavailable."""
    try:
        cap = int(pltpu.get_tpu_info().vmem_capacity_bytes)
    except Exception:
        cap = 64 * 2**20
    return (cap * 3) // 4


def _pick_tile(total: int, cap: int, quantum: int) -> int:
    """Largest divisor of `total` that is <= cap and a multiple of `quantum`;
    falls back to the full extent (always a legal Pallas block)."""
    if total <= cap:
        return total
    for t in range(cap, 0, -1):
        if total % t == 0 and t % quantum == 0:
            return t
    return total


# ---------------------------------------------------------------- kernels

def _kv_proj_kernel(c_ref, wk_ref, bk_ref, wv_ref, bv_ref, k_ref, v_ref):
    """K/V projection, hoisted out of the attention grid (run once per
    (batch, Tc tile)).  bf16 MXU inputs, f32 accumulation, bf16 outputs."""
    cb = c_ref[...].astype(jnp.bfloat16)                       # (tkv, Dc)
    k = jnp.dot(cb, wk_ref[...], preferred_element_type=jnp.float32) + bk_ref[...]
    v = jnp.dot(cb, wv_ref[...], preferred_element_type=jnp.float32) + bv_ref[...]
    k_ref[...] = k.astype(k_ref.dtype)
    v_ref[...] = v.astype(v_ref.dtype)


def _mhsdpa_kernel(*refs, n_head, has_mask):
    """Flash-style attention step for one (batch, q tile, kv tile) grid point."""
    if has_mask:
        (x_ref, k_ref, v_ref, mask_ref,
         wq_ref, bq_ref, wo_ref, bo_ref,
         o_ref, q_scr, y_scr, m_scr, l_scr, acc_scr) = refs
    else:
        (x_ref, k_ref, v_ref,
         wq_ref, bq_ref, wo_ref, bo_ref,
         o_ref, q_scr, y_scr, m_scr, l_scr, acc_scr) = refs
        mask_ref = None

    j = pl.program_id(2)
    Dh = q_scr.shape[1]
    dh = Dh // n_head

    # ---- per-query-tile init: project q once (scale already folded into
    #      wq/bq by the wrapper) and reset the online-softmax state.
    @pl.when(j == 0)
    def _init():
        xb = x_ref[...].astype(jnp.bfloat16)                   # (tq, Dx)
        q = jnp.dot(xb, wq_ref[...], preferred_element_type=jnp.float32) + bq_ref[...]
        q_scr[...] = q.astype(jnp.bfloat16)
        m_scr[...] = jnp.full_like(m_scr, -jnp.inf)
        l_scr[...] = jnp.zeros_like(l_scr)
        acc_scr[...] = jnp.zeros_like(acc_scr)

    qb = q_scr[...]                                            # (tq, Dh)  bf16
    kb = k_ref[...]                                            # (tkv, Dh) bf16
    vb = v_ref[...]                                            # (tkv, Dh) bf16
    if has_mask:
        attend = mask_ref[...] != 0                            # (tq, tkv) bool

    dims = (((1,), (1,)), ((), ()))                            # contract last dims (no k.T)
    for hd in range(n_head):
        lo = hd * dh
        s = lax.dot_general(qb[:, lo:lo + dh], kb[:, lo:lo + dh], dims,
                            preferred_element_type=jnp.float32)     # (tq, tkv)
        if has_mask:
            s = jnp.where(attend, s, NEG_INF)
        m_old = m_scr[:, hd:hd + 1]
        m_new = jnp.maximum(m_old, jnp.max(s, axis=-1, keepdims=True))
        alpha = jnp.exp(m_old - m_new)
        p = jnp.exp(s - m_new)                                 # un-normalized probs
        l_scr[:, hd:hd + 1] = alpha * l_scr[:, hd:hd + 1] + jnp.sum(
            p, axis=-1, keepdims=True)
        acc_scr[:, lo:lo + dh] = alpha * acc_scr[:, lo:lo + dh] + jnp.dot(
            p.astype(jnp.bfloat16), vb[:, lo:lo + dh],
            preferred_element_type=jnp.float32)
        m_scr[:, hd:hd + 1] = m_new

    # ---- finalize: normalize AFTER P@V on the (tq, dh) accumulator (per
    #      head), pack heads into one bf16 slab, single (tq,Dh)@(Dh,Dx) GEMM.
    @pl.when(j == pl.num_programs(2) - 1)
    def _finalize():
        # approx reciprocal (EUP) is ~1e-3 rel error; fine for inference /
        # the 2e-2 test tolerance.  Use approx=False for tight accuracy.
        inv_l = pl.reciprocal(l_scr[...], approx=True)         # (tq, n_head)
        for hd in range(n_head):
            lo = hd * dh
            y_scr[:, lo:lo + dh] = (acc_scr[:, lo:lo + dh]
                                    * inv_l[:, hd:hd + 1]).astype(jnp.bfloat16)
        out = jnp.dot(y_scr[...], wo_ref[...],
                      preferred_element_type=jnp.float32) + bo_ref[...]
        o_ref[...] = out.astype(o_ref.dtype)


# ---------------------------------------------------------------- wrapper

def multihead_attention(x, context, params, n_head, mask=None, *,
                        tq=None, tkv=None, tq_cap=256, tkv_cap=512):
    """x: (B, Tx, Dx), context: (B, Tc, Dc), mask: optional (1,1,Tx,Tc)."""
    wq, bq, wkv, bkv, wo, bo = params
    B, Tx, Dx = x.shape
    Bc, Tc, Dc = context.shape
    assert Bc == B
    Dh = wq.shape[1]
    assert Dh % n_head == 0
    dh = Dh // n_head
    f32, bf16 = jnp.float32, jnp.bfloat16

    # fold the 1/sqrt(dh) softmax scale into the q projection (free)
    scale = 1.0 / math.sqrt(dh)
    wq_b = (wq * scale).astype(bf16)
    bq_f = (bq * scale).astype(f32)
    # split the fused kv projection so kernels never lane-slice (Tc, 2*Dh)
    wk_b = wkv[:, :Dh].astype(bf16)
    wv_b = wkv[:, Dh:].astype(bf16)
    bk_f = bkv[:, :Dh].astype(f32)
    bv_f = bkv[:, Dh:].astype(f32)
    wo_b = wo.astype(bf16)
    bo_f = bo.astype(f32)

    # ---- tiling (demo shapes fall back to full extents) ----
    if tq is None:
        tq = _pick_tile(Tx, tq_cap, 32)      # v6e can pass tq_cap=512; v5e keep 128-256
    if tkv is None:
        tkv = _pick_tile(Tc, tkv_cap, 128)
    assert Tx % tq == 0 and Tc % tkv == 0
    nq, nkv = Tx // tq, Tc // tkv

    vmem_cap = _vmem_cap_bytes()
    wbuf = 1 if _single_buffer_supported() else 2   # weight buffer count

    # ================= stage 1: K / V projection (hoisted) =================
    kv_weights = [wk_b, bk_f, wv_b, bv_f]
    kv_wbytes = sum(int(w.size) * w.dtype.itemsize for w in kv_weights)
    kv_foot = (wbuf * kv_wbytes
               + 2 * tkv * Dc * 4              # context tiles (double-buffered)
               + 2 * 2 * tkv * Dh * 2          # k / v output tiles
               + 2 * tkv * Dh * 4)             # f32 intermediates
    kv_cost = pl.CostEstimate(
        flops=int(2 * B * Tc * Dc * 2 * Dh), transcendentals=0,
        bytes_accessed=int(4 * context.size + 2 * 2 * B * Tc * Dh + kv_wbytes))

    k_bf, v_bf = pl.pallas_call(
        _kv_proj_kernel,
        out_shape=(jax.ShapeDtypeStruct((B, Tc, Dh), bf16),
                   jax.ShapeDtypeStruct((B, Tc, Dh), bf16)),
        grid_spec=pltpu.PrefetchScalarGridSpec(
            num_scalar_prefetch=0,
            grid=(B, nkv),
            in_specs=[pl.BlockSpec((None, tkv, Dc), lambda b, t: (b, t, 0))]
                     + [_const_spec(w.shape) for w in kv_weights],
            out_specs=[pl.BlockSpec((None, tkv, Dh), lambda b, t: (b, t, 0)),
                       pl.BlockSpec((None, tkv, Dh), lambda b, t: (b, t, 0))],
        ),
        compiler_params=pltpu.CompilerParams(
            dimension_semantics=("parallel", "parallel"),
            vmem_limit_bytes=int(min(vmem_cap, max(16 << 20, kv_foot + (4 << 20)))),
        ),
        cost_estimate=kv_cost,
    )(context, *kv_weights)

    # ================= stage 2: flash-style attention + output projection ==
    has_mask = mask is not None
    inputs = [x, k_bf, v_bf]
    in_specs = [
        pl.BlockSpec((None, tq, Dx), lambda b, i, j: (b, i, 0)),   # x tile (resident over j)
        pl.BlockSpec((None, tkv, Dh), lambda b, i, j: (b, j, 0)),  # K tile
        pl.BlockSpec((None, tkv, Dh), lambda b, i, j: (b, j, 0)),  # V tile
    ]
    if has_mask:
        # int8 mask (4x less HBM/VMEM than f32), shared across batch & heads
        # as per the module contract (mask is (1, 1, Tx, Tc)).
        # TODO(synk): for causal masks, generate in-kernel via broadcasted_iota
        # + program_id offsets and skip fully-masked KV tiles instead of DMAing.
        mask2d = jnp.asarray(mask).reshape(Tx, Tc).astype(jnp.int8)
        inputs.append(mask2d)
        in_specs.append(pl.BlockSpec((tq, tkv), lambda b, i, j: (i, j)))

    attn_weights = [wq_b, bq_f, wo_b, bo_f]
    inputs += attn_weights
    in_specs += [_const_spec(w.shape) for w in attn_weights]

    out_spec = pl.BlockSpec((None, tq, Dx), lambda b, i, j: (b, i, 0))

    scratch = [
        pltpu.VMEM((tq, Dh), bf16),        # q (scale folded in), resident over j
        pltpu.VMEM((tq, Dh), bf16),        # packed per-head outputs (epilogue slab)
        pltpu.VMEM((tq, n_head), f32),     # running max per head
        pltpu.VMEM((tq, n_head), f32),     # running sum per head
        pltpu.VMEM((tq, Dh), f32),         # running P@V accumulator
    ]

    wbytes = sum(int(w.size) * w.dtype.itemsize for w in attn_weights)
    foot = (wbuf * wbytes
            + 2 * tq * Dx * 4                       # x tiles
            + 2 * 2 * tkv * Dh * 2                  # K / V tiles
            + (2 * tq * tkv if has_mask else 0)     # mask tiles
            + 2 * tq * Dx * 4                       # output tile
            + 2 * tq * Dh * 2 + tq * Dh * 4 + 2 * tq * n_head * 4   # scratch
            + 3 * tq * tkv * 4 + tq * Dh * 4)       # s / p / q intermediates
    vmem_limit = int(min(vmem_cap, max(16 << 20, foot + (4 << 20))))

    flops = 2 * B * (Tx * Dx * Dh + 2 * Tx * Tc * Dh + Tx * Dh * Dx)
    bytes_accessed = int(4 * (x.size + B * Tx * Dx) + 2 * 2 * B * Tc * Dh + wbytes
                         + (Tx * Tc if has_mask else 0))
    cost = pl.CostEstimate(flops=int(flops),
                           transcendentals=int(B * n_head * Tx * Tc),
                           bytes_accessed=bytes_accessed)

    return pl.pallas_call(
        partial(_mhsdpa_kernel, n_head=n_head, has_mask=has_mask),
        out_shape=jax.ShapeDtypeStruct((B, Tx, Dx), x.dtype),
        grid_spec=pltpu.PrefetchScalarGridSpec(
            num_scalar_prefetch=0,
            grid=(B, nq, nkv),                      # KV reduction axis last
            in_specs=in_specs,
            out_specs=out_spec,
            scratch_shapes=scratch,
        ),
        compiler_params=pltpu.CompilerParams(
            dimension_semantics=("parallel", "parallel", "arbitrary"),
            vmem_limit_bytes=vmem_limit,
        ),
        cost_estimate=cost,
    )(*inputs)


# ---------------------------------------------------------------- reference (pure JAX)

def attention_ref(x, context, params, n_head, mask=None):
    wq, bq, wkv, bkv, wo, bo = params
    B, Tx, Dx = x.shape
    Tc = context.shape[1]
    Dh = wq.shape[1]
    dh = Dh // n_head

    q = x @ wq + bq
    kv = context @ wkv + bkv
    k, v = kv[..., :Dh], kv[..., Dh:]
    q = q.reshape(B, Tx, n_head, dh).transpose(0, 2, 1, 3)
    k = k.reshape(B, Tc, n_head, dh).transpose(0, 2, 1, 3)
    v = v.reshape(B, Tc, n_head, dh).transpose(0, 2, 1, 3)
    s = jnp.einsum("bhqd,bhkd->bhqk", q, k) / math.sqrt(dh)
    if mask is not None:
        s = jnp.where(mask, s, NEG_INF)      # mask (1,1,Tx,Tc) broadcasts over (B,H)
    p = jax.nn.softmax(s, axis=-1)
    y = jnp.einsum("bhqk,bhkd->bhqd", p, v).transpose(0, 2, 1, 3).reshape(B, Tx, Dh)
    return y @ wo + bo


# ---------------------------------------------------------------- main

if __name__ == "__main__":
    B, n_head = 2, 4
    Tx, Tc = 16, 16
    Dx = Dc = 32
    Dh = 32                                   # size_hidden, dh = 8

    key = jax.random.PRNGKey(0)
    ks = jax.random.split(key, 7)

    def w(k, shp, s=0.02):
        return (s * jax.random.normal(k, shp)).astype(jnp.float32)

    # nn.Linear weights stored transposed (in, out); biases as (1, N) rows.
    wq = w(ks[0], (Dx, Dh));      bq = w(ks[1], (1, Dh), 0.01)
    wkv = w(ks[2], (Dc, 2 * Dh)); bkv = w(ks[3], (1, 2 * Dh), 0.01)
    wo = w(ks[4], (Dh, Dx));      bo = jnp.zeros((1, Dx), jnp.float32)
    params = (wq, bq, wkv, bkv, wo, bo)

    x = jax.random.normal(ks[5], (B, Tx, Dx), dtype=jnp.float32)
    ctx = jax.random.normal(ks[6], (B, Tc, Dc), dtype=jnp.float32)

    # boolean mask (1, 1, Tx, Tc), e.g. causal
    mask = jnp.tril(jnp.ones((Tx, Tc), dtype=bool))[None, None]

    # masked path
    out_m = jax.block_until_ready(multihead_attention(x, ctx, params, n_head, mask=mask))
    ref_m = jax.block_until_ready(attention_ref(x, ctx, params, n_head, mask=mask))
    assert out_m.shape == (B, Tx, Dx)
    err_m = float(jnp.max(jnp.abs(out_m - ref_m)))
    assert jnp.allclose(out_m, ref_m, atol=2e-2, rtol=2e-2), err_m

    # unmasked path (plain cross attention)
    out_n = jax.block_until_ready(multihead_attention(x, ctx, params, n_head, mask=None))
    ref_n = attention_ref(x, ctx, params, n_head, mask=None)
    err_n = float(jnp.max(jnp.abs(out_n - ref_n)))
    assert jnp.allclose(out_n, ref_n, atol=2e-2, rtol=2e-2), err_n

    print("KERNEL_OK")
</pallas_src>

<mosaic_0001>
module attributes {stable_mosaic.version = 11 : i64} {
  func.func @_probe_copy_kernel(%arg0: i32, %arg1: memref<8x128xf32, #tpu.memory_space<vmem>>, %arg2: memref<8x128xf32, #tpu.memory_space<vmem>>) attributes {dimension_semantics = [#tpu.dimension_semantics<arbitrary>], iteration_bounds = array<i64: 1>, scalar_prefetch = 0 : i64, scratch_operands = 0 : i64, tpu.core_type = #tpu.core_type<tc>, window_params = [{pipeline_mode = #tpu.pipeline_mode<synchronous>, transform_indices = @transform_0, window_bounds = array<i64: 8, 128>}, {pipeline_mode = #tpu.pipeline_mode<synchronous>, transform_indices = @transform_1, window_bounds = array<i64: 8, 128>}]} {
    %c0 = arith.constant 0 : index
    %c0_0 = arith.constant 0 : index
    %0 = vector.load %arg1[%c0, %c0_0] : memref<8x128xf32, #tpu.memory_space<vmem>>, vector<8x128xf32>
    %c0_1 = arith.constant 0 : index
    %c0_2 = arith.constant 0 : index
    %1 = vector.load %arg2[%c0_1, %c0_2] : memref<8x128xf32, #tpu.memory_space<vmem>>, vector<8x128xf32>
    tpu.vector_store %arg2[%c0_1, %c0_2], %0 {strides = array<i32>} : memref<8x128xf32, #tpu.memory_space<vmem>>, vector<8x128xf32>,
    return
  }
  func.func @transform_0(%arg0: i32) -> (i32, i32) {
    %c0_i32 = arith.constant 0 : i32
    %c0_i32_0 = arith.constant 0 : i32
    %c0_i32_1 = arith.constant 0 : i32
    return %c0_i32, %c0_i32_0 : i32, i32
  }
  func.func @transform_1(%arg0: i32) -> (i32, i32) {
    %c0_i32 = arith.constant 0 : i32
    %c0_i32_0 = arith.constant 0 : i32
    %c0_i32_1 = arith.constant 0 : i32
    return %c0_i32, %c0_i32_0 : i32, i32
  }
}

module attributes {stable_mosaic.version = 11 : i64} {
  func.func @_kv_proj_kernel(%arg0: i32, %arg1: i32, %arg2: memref<1x16x32xf32, #tpu.memory_space<vmem>>, %arg3: memref<32x32xbf16, #tpu.memory_space<vmem>>, %arg4: memref<1x32xf32, #tpu.memory_space<vmem>>, %arg5: memref<32x32xbf16, #tpu.memory_space<vmem>>, %arg6: memref<1x32xf32, #tpu.memory_space<vmem>>, %arg7: memref<1x16x32xbf16, #tpu.memory_space<vmem>>, %arg8: memref<1x16x32xbf16, #tpu.memory_space<vmem>>) attributes {dimension_semantics = [#tpu.dimension_semantics<parallel>, #tpu.dimension_semantics<parallel>], iteration_bounds = array<i64: 2, 1>, scalar_prefetch = 0 : i64, scratch_operands = 0 : i64, tpu.core_type = #tpu.core_type<tc>, window_params = [{transform_indices = @transform_0, window_bounds = array<i64: 1, 16, 32>}, {pipeline_mode = #tpu.pipeline_mode<synchronous>, transform_indices = @transform_1, window_bounds = array<i64: 32, 32>}, {pipeline_mode = #tpu.pipeline_mode<synchronous>, transform_indices = @transform_2, window_bounds = array<i64: 1, 32>}, {pipeline_mode = #tpu.pipeline_mode<synchronous>, transform_indices = @transform_3, window_bounds = array<i64: 32, 32>}, {pipeline_mode = #tpu.pipeline_mode<synchronous>, transform_indices = @transform_4, window_bounds = array<i64: 1, 32>}, {transform_indices = @transform_5, window_bounds = array<i64: 1, 16, 32>}, {transform_indices = @transform_6, window_bounds = array<i64: 1, 16, 32>}]} {
    %c0 = arith.constant 0 : index
    %c0_0 = arith.constant 0 : index
    %c0_1 = arith.constant 0 : index
    %0 = vector.load %arg2[%c0, %c0_0, %c0_1] : memref<1x16x32xf32, #tpu.memory_space<vmem>>, vector<1x16x32xf32>
    %1 = vector.shape_cast %0 : vector<1x16x32xf32> to vector<16x32xf32>
    %2 = arith.truncf %1 : vector<16x32xf32> to vector<16x32xbf16>
    %c0_2 = arith.constant 0 : index
    %c0_3 = arith.constant 0 : index
    %3 = vector.load %arg3[%c0_2, %c0_3] : memref<32x32xbf16, #tpu.memory_space<vmem>>, vector<32x32xbf16>
    %cst = arith.constant dense<0.000000e+00> : vector<16x32xf32>
    %4 = tpu.matmul %2, %3, %cst {dimension_numbers = #tpu.dot_dimension_numbers<[1], [0], [0], [1], [0, 0, 1, 1], [], []>} : vector<16x32xbf16>, vector<32x32xbf16>, vector<16x32xf32> -> vector<16x32xf32>
    %c0_4 = arith.constant 0 : index
    %c0_5 = arith.constant 0 : index
    %5 = vector.load %arg4[%c0_4, %c0_5] : memref<1x32xf32, #tpu.memory_space<vmem>>, vector<1x32xf32>
    %6 = vector.broadcast %5 : vector<1x32xf32> to vector<16x32xf32>
    %7 = arith.addf %4, %6 : vector<16x32xf32>
    %c0_6 = arith.constant 0 : index
    %c0_7 = arith.constant 0 : index
    %8 = vector.load %arg5[%c0_6, %c0_7] : memref<32x32xbf16, #tpu.memory_space<vmem>>, vector<32x32xbf16>
    %cst_8 = arith.constant dense<0.000000e+00> : vector<16x32xf32>
    %9 = tpu.matmul %2, %8, %cst_8 {dimension_numbers = #tpu.dot_dimension_numbers<[1], [0], [0], [1], [0, 0, 1, 1], [], []>} : vector<16x32xbf16>, vector<32x32xbf16>, vector<16x32xf32> -> vector<16x32xf32>
    %c0_9 = arith.constant 0 : index
    %c0_10 = arith.constant 0 : index
    %10 = vector.load %arg6[%c0_9, %c0_10] : memref<1x32xf32, #tpu.memory_space<vmem>>, vector<1x32xf32>
    %11 = vector.broadcast %10 : vector<1x32xf32> to vector<16x32xf32>
    %12 = arith.addf %9, %11 : vector<16x32xf32>
    %13 = arith.truncf %7 : vector<16x32xf32> to vector<16x32xbf16>
    %c0_11 = arith.constant 0 : index
    %c0_12 = arith.constant 0 : index
    %c0_13 = arith.constant 0 : index
    %14 = vector.load %arg7[%c0_11, %c0_12, %c0_13] : memref<1x16x32xbf16, #tpu.memory_space<vmem>>, vector<1x16x32xbf16>
    %15 = vector.shape_cast %14 : vector<1x16x32xbf16> to vector<16x32xbf16>
    %16 = vector.shape_cast %13 : vector<16x32xbf16> to vector<1x16x32xbf16>
    tpu.vector_store %arg7[%c0_11, %c0_12, %c0_13], %16 {strides = array<i32>} : memref<1x16x32xbf16, #tpu.memory_space<vmem>>, vector<1x16x32xbf16>,
    %17 = arith.truncf %12 : vector<16x32xf32> to vector<16x32xbf16>
    %c0_14 = arith.constant 0 : index
    %c0_15 = arith.constant 0 : index
    %c0_16 = arith.constant 0 : index
    %18 = vector.load %arg8[%c0_14, %c0_15, %c0_16] : memref<1x16x32xbf16, #tpu.memory_space<vmem>>, vector<1x16x32xbf16>
    %19 = vector.shape_cast %18 : vector<1x16x32xbf16> to vector<16x32xbf16>
    %20 = vector.shape_cast %17 : vector<16x32xbf16> to vector<1x16x32xbf16>
    tpu.vector_store %arg8[%c0_14, %c0_15, %c0_16], %20 {strides = array<i32>} : memref<1x16x32xbf16, #tpu.memory_space<vmem>>, vector<1x16x32xbf16>,
    return
  }
  func.func @transform_0(%arg0: i32, %arg1: i32) -> (i32, i32, i32) {
    %c0_i32 = arith.constant 0 : i32
    %c0_i32_0 = arith.constant 0 : i32
    return %arg0, %arg1, %c0_i32 : i32, i32, i32
  }
  func.func @transform_1(%arg0: i32, %arg1: i32) -> (i32, i32) {
    %c0_i32 = arith.constant 0 : i32
    %c0_i32_0 = arith.constant 0 : i32
    %c0_i32_1 = arith.constant 0 : i32
    return %c0_i32, %c0_i32_0 : i32, i32
  }
  func.func @transform_2(%arg0: i32, %arg1: i32) -> (i32, i32) {
    %c0_i32 = arith.constant 0 : i32
    %c0_i32_0 = arith.constant 0 : i32
    %c0_i32_1 = arith.constant 0 : i32
    return %c0_i32, %c0_i32_0 : i32, i32
  }
  func.func @transform_3(%arg0: i32, %arg1: i32) -> (i32, i32) {
    %c0_i32 = arith.constant 0 : i32
    %c0_i32_0 = arith.constant 0 : i32
    %c0_i32_1 = arith.constant 0 : i32
    return %c0_i32, %c0_i32_0 : i32, i32
  }
  func.func @transform_4(%arg0: i32, %arg1: i32) -> (i32, i32) {
    %c0_i32 = arith.constant 0 : i32
    %c0_i32_0 = arith.constant 0 : i32
    %c0_i32_1 = arith.constant 0 : i32
    return %c0_i32, %c0_i32_0 : i32, i32
  }
  func.func @transform_5(%arg0: i32, %arg1: i32) -> (i32, i32, i32) {
    %c0_i32 = arith.constant 0 : i32
    %c0_i32_0 = arith.constant 0 : i32
    return %arg0, %arg1, %c0_i32 : i32, i32, i32
  }
  func.func @transform_6(%arg0: i32, %arg1: i32) -> (i32, i32, i32) {
    %c0_i32 = arith.constant 0 : i32
    %c0_i32_0 = arith.constant 0 : i32
    return %arg0, %arg1, %c0_i32 : i32, i32, i32
  }
}

</mosaic_0001>

<bundles_post_ra>
// kernel: tpu_custom_call.1
= control target key start
LH: loop header
LB: loop body
LE: loop exit
PB: predicated region body
PF: predicated region fallthrough
CT: control target
= control target key end

     0   :  { %6 = vsyncpa [#allocation3], 0  ;;  %s124_s0 = inlined_call_operand.hbm [shape: f32[8,128], index: 0, kind: input, shape index: {}]   ;;  %s125_s1 = inlined_call_operand.hbm [shape: f32[8,128], index: 1, kind: output, shape index: {}]  }
   0x1   :  { %7 = vsyncpa [#allocation4], 0  ;;  %s88_s6 = smov [#allocation2]   ;;  %s40_s10 = scalar_lea.hbm %s124_s0, 128 }
   0x2   :  { %s14_s7 = sshll.u32 %s88_s6, 4  ;;  %p41_p0 = scmp.ne.s32.totalorder %s124_s0, %s40_s10  ;;  %s15_s7 = int_to_ptr.vmem [resolvable:$true] %s14_s7 }
   0x3   :  { %p44_p1 = scmp.lt.u32.totalorder %s40_s10, %s124_s0 }
   0x5   :  { %p46_p2 = pnand %p44_p1, %p41_p0 }
   0x7   :  { %49 = shalt.err (!%p46_p2)
}
   0x8   :  { %s50_s15 = scalar_lea.vmem %s15_s7, 128  ;;  %p55_p4 = scmp.lt.s32.totalorder %s15_s7, %s15_s7 }
   0x9   :  { %p51_p3 = scmp.ne.s32.totalorder %s15_s7, %s50_s15  ;;  %p56_p5 = scmp.lt.s32.totalorder %s50_s15, %s50_s15 }
   0xb   :  { %p57_p6 = por %p56_p5, %p55_p4 }
   0xd   :  { %p58_p7 = pnand %p57_p6, %p51_p3 }
   0xf   :  { %61 = shalt.err (!%p58_p7)
}
  0x10   :  { %17 = dma.hbm_to_vmem [thread:$0]  %s124_s0, 128, %s15_s7, [#allocation3]  }
  0x11   :  { %84 = dma.done.wait [#allocation3], 128  }
  0x12   :  { %85 = vsyncadd [#allocation3], 4294967168  ;;  %s89_s18 = smov [#allocation5]   ;;  %v21_v0 = vld [vmem:[#allocation2] sm:$0xff] }
  0x13   :  { %s29_s19 = sshll.u32 %s89_s18, 4  ;;  %22 = vst [vmem:[#allocation5] sm:$0xff] %v21_v0  ;;  %s30_s19 = int_to_ptr.vmem [resolvable:$true] %s29_s19 }
  0x14   :  { %s62_s20 = scalar_lea.vmem %s30_s19, 128  ;;  %p67_p9 = scmp.lt.s32.totalorder %s30_s19, %s30_s19 }
  0x15   :  { %p63_p8 = scmp.ne.s32.totalorder %s30_s19, %s62_s20  ;;  %p68_p10 = scmp.lt.s32.totalorder %s62_s20, %s62_s20 }
  0x17   :  { %p69_p11 = por %p68_p10, %p67_p9 }
  0x19   :  { %p70_p12 = pnand %p69_p11, %p63_p8 }
  0x1b   :  { %73 = shalt.err (!%p70_p12)
}
  0x1c   :  { %s74_s23 = scalar_lea.hbm %s125_s1, 128 }
  0x1d   :  { %p75_p13 = scmp.ne.s32.totalorder %s125_s1, %s74_s23  ;;  %p78_p0 = scmp.lt.u32.totalorder %s74_s23, %s125_s1 }
  0x1f   :  { %p80_p1 = pnand %p78_p0, %p75_p13 }
  0x21   :  { %83 = shalt.err (!%p80_p1)
}
  0x22   :  { %32 = dma.vmem_to_hbm [thread:$0]  %s30_s19, 128, %s125_s1, [#allocation4]  }
  0x23   :  { %86 = dma.done.wait [#allocation4], 128  }
  0x24   :  { %87 = vsyncadd [#allocation4], 4294967168 }
  0x25   :  { %36 = vsyncpa [#allocation3], 1 }
  0x26   :  { %37 = vsyncpa [#allocation4], 1 }

// kernel: tpu_custom_call.1
= control target key start
LH: loop header
LB: loop body
LE: loop exit
PB: predicated region body
PF: predicated region fallthrough
CT: control target
= control target key end

     0   :  { %12 = vsyncpa [#allocation3], 0  ;;  %s1391_s0 = inlined_call_operand.hbm [shape: f32[2,16,32], index: 0, kind: input, shape index: {}]   ;;  %s1392_s1 = inlined_call_operand.hbm [shape: bf16[32,32], index: 1, kind: input, shape index: {}]   ;;  %s1393_s2 = inlined_call_operand.vmem [shape: f32[1,32], index: 2, kind: input, shape index: {}]   ;;  %s1394_s3 = inlined_call_operand.hbm [shape: bf16[32,32], index: 3, kind: input, shape index: {}]   ;;  %s1395_s4 = inlined_call_operand.vmem [shape: f32[1,32], index: 4, kind: input, shape index: {}]   ;;  %s1396_s5 = inlined_call_operand.hbm [shape: bf16[2,16,32], index: 5, kind: output, shape index: {0}]   ;;  %s1397_s6 = inlined_call_operand.hbm [shape: bf16[2,16,32], index: 6, kind: output, shape index: {1}]  }
   0x1   :  { %14 = vsyncpa [#allocation3 + $0x1], 0 }
   0x2   :  { %15 = vsyncpa [#allocation6], 0 }
   0x3   :  { %16 = vsyncpa [#allocation4], 0 }
   0x4   :  { %18 = vsyncpa [#allocation4 + $0x1], 0 }
   0x5   :  { %19 = vsyncpa [#allocation10], 0 }
   0x6   :  { %21 = vsyncpa [#allocation10 + $0x1], 0  ;;  %s1088_s21 = smov 0   ;;  %s1090_s22 = smov 0  }
   0x7   :  { %s1092_s23 = smov 0   ;;  %s1094_s24 = smov 0  }
   0x8   :  { %s1096_s25 = smov 0   ;;  %s1098_s26 = smov 0  }
   0x9 LB: > { %s670_s27 = sadd.s32 4294967295, %s1038_s26   ;;  %s671_s28 = sadd.s32 4294967294, %s1038_s26   ;;  %s1038_s26 = sphi %s1098_s26, %s27_s26   ;;  %s1034_s25 = sphi %s1096_s25, %s1422_s25   ;;  %s1030_s24 = sphi %s1094_s24, %s1421_s24   ;;  %s1026_s23 = sphi %s1092_s23, %s1420_s23   ;;  %s1022_s22 = sphi %s1090_s22, %s1419_s22   ;;  %s1018_s21 = sphi %s1088_s21, %s1418_s21  }
   0xa   : > { %p61_p0 = scmp.ne.s32.totalorder %s1022_s22, %s1018_s21  ;;  %p1122_p1 = scmp.eq.s32.totalorder %s670_s27, 0 }
   0xb   : > { %p1126_p2 = scmp.eq.s32.totalorder %s670_s27, 1  ;;  %p177_p3 = scmp.eq.s32.totalorder %s671_s28, 1 }
   0xc   : > { %s1403_s29 = scalar_select %p1122_p1, 1, 0 }
   0xd   : > { %p1132_p4 = por %p1122_p1, %p61_p0  ;;  %p672_p5 = scmp.ge.s32.totalorder %s1038_s26, 1 }
   0xe   : > { %p1137_p6 = por %p177_p3, %p61_p0  ;;  %p212_p7 = scmp.lt.s32.totalorder %s1038_s26, 3 }
   0xf   : > { %s1405_s7 = scalar_select %p1132_p4, 1, 0 }
  0x10   : > { %s1406_s8 = scalar_select %p1137_p6, 1, 0 }
  0x11   : > { %p1142_p8 = pnand %p672_p5, %p212_p7  ;;  %s1040_s10 = smov [#allocation5]  }
  0x12   : > { %1407 = sst [smem:[#allocation15_spill]] %s1406_s8  ;;  %s224_s11 = sshll.u32 %s1040_s10, 4  ;;  %s1146_s11 = int_to_ptr.vmem [resolvable:$true] %s224_s11 }
  0x13   : > { %p748_p9 = pneg %p1142_p8  ;;  %s1041_s13 = smov [#allocation7]  }
  0x14   : > { %s240_s14 = sshll.u32 %s1041_s13, 4  ;;  %s834_s17 = scalar_lea.hbm %s1392_s1, 256  ;;  %s1157_s14 = int_to_ptr.vmem [resolvable:$true] %s240_s14 }
  0x15   : > { %p1153_p11 = pnand %p748_p9, %p1122_p1  ;;  %p835_p12 = scmp.ne.s32.totalorder %s1392_s1, %s834_s17 }
  0x16   : > { %p841_p5 = scmp.lt.u32.totalorder %s834_s17, %s1392_s1 }
  0x17   : > { %p836_p13 = pneg %p1153_p11 }
  0x19   : > { %p837_p0 = pnand %p836_p13, %p835_p12 }
  0x1b   : > { %p838_p3 = pneg %p837_p0 }
  0x1d   : > { %p843_p7 = pnand %p841_p5, %p838_p3 }
  0x1f   : > { %846 = shalt.err (!%p843_p7)
}
  0x20   : > { %s847_s28 = scalar_lea.vmem %s1146_s11, 256  ;;  %p855_p1 = scmp.lt.s32.totalorder %s1146_s11, %s1146_s11 }
  0x21   : > { %p848_p9 = scmp.ne.s32.totalorder %s1146_s11, %s847_s28  ;;  %p856_p12 = scmp.lt.s32.totalorder %s847_s28, %s847_s28 }
  0x23   : > { %p850_p10 = pnand %p848_p9, %p836_p13  ;;  %p857_p0 = por %p856_p12, %p855_p1 }
  0x25   : > { %p851_p6 = pneg %p850_p10 }
  0x27   : > { %p858_p4 = pnand %p857_p0, %p851_p6 }
  0x29   : > { %861 = shalt.err (!%p858_p4)
}
  0x2a   : > { %s1042_s10 = smov 64   ;;  %s1043_s13 = smov 4  }
  0x2b   : > { %751 = dma.hbm_to_vmem [thread:$0]  (!%p1153_p11), %s1392_s1, 256, %s1146_s11, [#allocation6], %s1042_s10, %s1042_s10, %s1043_s13  }
  0x2c   : > { %s862_s19 = scalar_lea.hbm %s1394_s3, 256 }
  0x2d   : > { %p863_p1 = scmp.ne.s32.totalorder %s1394_s3, %s862_s19  ;;  %p869_p10 = scmp.lt.u32.totalorder %s862_s19, %s1394_s3 }
  0x2f   : > { %p865_p4 = pnand %p863_p1, %p836_p13 }
  0x31   : > { %p866_p6 = pneg %p865_p4 }
  0x33   : > { %p871_p3 = pnand %p869_p10, %p866_p6 }
  0x35   : > { %874 = shalt.err (!%p871_p3)
}
  0x36   : > { %s875_s11 = scalar_lea.vmem %s1157_s14, 256  ;;  %p883_p12 = scmp.lt.s32.totalorder %s1157_s14, %s1157_s14 }
  0x37   : > { %p876_p5 = scmp.ne.s32.totalorder %s1157_s14, %s875_s11  ;;  %p884_p0 = scmp.lt.s32.totalorder %s875_s11, %s875_s11 }
  0x39   : > { %p878_p7 = pnand %p876_p5, %p836_p13  ;;  %p885_p1 = por %p884_p0, %p883_p12 }
  0x3b   : > { %p879_p9 = pneg %p878_p7 }
  0x3d   : > { %p886_p4 = pnand %p885_p1, %p879_p9 }
  0x3f   : > { %889 = shalt.err (!%p886_p4)
}
  0x40   : > { %754 = dma.hbm_to_vmem [thread:$0]  (!%p1153_p11), %s1394_s3, 256, %s1157_s14, [#allocation6], %s1042_s10, %s1042_s10, %s1043_s13  }
  0x41   : > { %s39_s16 = sadd.s32 1, %s1034_s25  ;;  %s48_s17 = sadd.s32 1, %s1026_s23 }
  0x42   : > { %p41_p13 = scmp.ge.s32.totalorder %s39_s16, 2  ;;  %p55_p6 = scmp.ne.s32.totalorder %s1026_s23, %s1022_s22 }
  0x43   : > { %p56_p10 = scmp.eq.s32.totalorder %s1038_s26, 0  ;;  %p768_p3 = scmp.lt.s32.totalorder %s1038_s26, 2 }
  0x44   : > { %s1424_s16 = smov (%p41_p13, %s39_s16), 0  ;;  %p1221_p7 = por %p1126_p2, %p55_p6 }
  0x45   : > { %p57_p5 = por %p56_p10, %p55_p6  ;;  %s43_s18 = ssub.s32 %s1034_s25, %s1424_s16 }
  0x46   : > { %s1410_s12 = scalar_select %p1221_p7, 1, 0 }
  0x47   : > { %s257_s19 = sand.u32 1, %s1026_s23   ;;  %p46_p9 = scmp.eq.s32.totalorder %s43_s18, 0 }
  0x48   : > { %s676_s14 = sshll.u32 %s257_s19, 4  ;;  %s705_s10 = sshll.u32 %s1034_s25, 8 }
  0x49   : > { %s1230_s13 = scalar_select %p46_p9, %s1026_s23, %s48_s17  }
  0x4a   : > { %s1235_s28 = scalar_lea.hbm %s1391_s0, %s705_s10  ;;  %s261_s30 = scalar_lea.vmem [#allocation2], %s676_s14 }
  0x4b   : > { %s270_s11 = sshll.u32 %s261_s30, 4  ;;  %p1239_p2 = pnand %p768_p3, %p57_p5  ;;  %s1243_s11 = int_to_ptr.vmem [resolvable:$true] %s270_s11 }
  0x4c   : > { %s1245_s15 = scalar_lea.sflag [#allocation3], %s257_s19  ;;  %s890_s17 = scalar_lea.hbm %s1235_s28, 256 }
  0x4d   : > { %p891_p11 = scmp.ne.s32.totalorder %s1235_s28, %s890_s17  ;;  %p892_p12 = pneg %p1239_p2 }
  0x4e   : > { %s895_s10 = scalar_lea.hbm %s1391_s0, 512  ;;  %p896_p4 = scmp.lt.u32.totalorder %s1235_s28, %s1391_s0 }
  0x4f   : > { %p893_p0 = pnand %p892_p12, %p891_p11  ;;  %p897_p13 = scmp.lt.u32.totalorder %s895_s10, %s890_s17 }
  0x50   : > { %p899_p10 = scmp.lt.u32.totalorder %s890_s17, %s1235_s28 }
  0x51   : > { %p894_p1 = pneg %p893_p0  ;;  %p898_p6 = por %p897_p13, %p896_p4 }
  0x53   : > { %p900_p3 = por %p899_p10, %p898_p6 }
  0x55   : > { %p901_p5 = pnand %p900_p3, %p894_p1 }
  0x57   : > { %904 = shalt.err (!%p901_p5)
}
  0x58   : > { %s905_s19 = scalar_lea.vmem %s1243_s11, 256  ;;  %s1044_s30 = smov [#allocation2]  }
  0x59   : > { %p906_p9 = scmp.ne.s32.totalorder %s1243_s11, %s905_s19  ;;  %s910_s18 = sshll.u32 %s1044_s30, 4  ;;  %s911_s18 = int_to_ptr.vmem [resolvable:$false] %s910_s18 }
  0x5a   : > { %s912_s14 = scalar_lea.vmem %s911_s18, 512  ;;  %p913_p7 = scmp.lt.s32.totalorder %s1243_s11, %s911_s18 }
  0x5b   : > { %p908_p11 = pnand %p906_p9, %p892_p12  ;;  %p914_p4 = scmp.lt.s32.totalorder %s912_s14, %s905_s19 }
  0x5d   : > { %p909_p0 = pneg %p908_p11  ;;  %p915_p13 = por %p914_p4, %p913_p7 }
  0x5f   : > { %p916_p6 = pnand %p915_p13, %p909_p0 }
  0x61   : > { %919 = shalt.err (!%p916_p6)
}
  0x62   : > { %s1045_s17 = smov 128   ;;  %s1046_s10 = smov 8  }
  0x63   : > { %758 = dma.hbm_to_vmem [thread:$0]  (!%p1239_p2), %s1235_s28, 256, %s1243_s11, %s1245_s15, %s1045_s17, %s1045_s17, %s1046_s10  }
  0x64   : > { %282 = sbr.rel (%p1142_p8) target bundleno = 377 (0x179), region = 40  ;;  %s1276_s20 = sand.u32 (!%p1142_p8), 1, %s1022_s22  }
  0x65   : > { %s680_s27 = sshll.u32 (!%p1142_p8), %s1276_s20, 4  ;;  %s285_s19 = scalar_lea.sflag (!%p1142_p8), [#allocation3], %s1276_s20 }
  0x66   : > { %s288_s30 = scalar_lea.vmem (!%p1142_p8), [#allocation2], %s680_s27  ;;  %p1412_p7 = scmp.ne.s32.totalorder (!%p1142_p8), %s1405_s7, 0 }
  0x6b   : > { %1001 = dma.done.wait (%p1412_p7), %s285_s19, 256  }
  0x6c   : > { %1003 = vsyncadd (%p1412_p7), %s285_s19, 4294967040  ;;  %p1413_p12 = scmp.ne.s32.totalorder %s1403_s29, 0 }
  0x6e   : > { %1005 = dma.done.wait (%p1413_p12), [#allocation6], 512  }
  0x6f   : > { %1007 = vsyncadd (%p1413_p12), [#allocation6], 4294966784  ;;  %v1047_v0 = vmov 0.0   ;;  %vm1048_vm0 = vmmov 0   ;;  %v830_v1 = vld [vmem:[#allocation5] sm:$0xff]   ;;  %v831_v2 = vld [vmem:[#allocation7] sm:$0xff]  }
  0x70   : > { %718 = vmatprep.subr.bf16.mxu0 %v1047_v0  ;;  %726 = vmatprep.subr.bf16.mxu1 %v1047_v0  ;;  %v832_v3 = vld [vmem:[#allocation5 + $0x8] sm:$0xff]   ;;  %v833_v4 = vld [vmem:[#allocation7 + $0x8] sm:$0xff]   ;;  %v334_v5 = vld [vmem:[%s288_s30] sm:$0xff]  ;;  %vm360_vm1 = vcmask 261120   ;;  %s683_s29 = sshll.u32 %s1276_s20, 3  ;;  %s710_s8 = sshll.u32 %s1030_s24, 7 }
  0x71   : > { %722 = vmatprep.mubr.msk.bf16.mxu0 %vm1048_vm0, %v1047_v0  ;;  %730 = vmatprep.mubr.msk.bf16.mxu1 %vm1048_vm0, %v1047_v0  ;;  %v335_v6 = vld [vmem:[%s288_s30 + $0x8] sm:$0xff]  ;;  %v685_v8 = vld [vmem:[%s1393_s2] ss:$0 sm:$0xff]  ;;  %s322_s15 = scalar_lea.vmem [#allocation8], %s683_s29  ;;  %vm477_vm2 = vcmask 257024   ;;  %s329_s14 = scalar_lea.vmem [#allocation9], %s683_s29 }
  0x72   : > { %719 = vmatpush3.bf16.msra.mxu0 %v830_v1  ;;  %727 = vmatpush3.bf16.msra.mxu1 %v831_v2  ;;  %v336_v7 = vpack.c.bf16 %v335_v6, %v334_v5  ;;  %v689_v9 = vld [vmem:[%s1395_s4] ss:$0 sm:$0xff]  ;;  %s511_s18 = sshll.u32 %s322_s15, 4  ;;  %s529_s17 = sshll.u32 %s329_s14, 4  ;;  %s1301_s18 = int_to_ptr.vmem [resolvable:$true] %s511_s18  ;;  %s1310_s17 = int_to_ptr.vmem [resolvable:$true] %s529_s17 }
  0x73   : > { %720 = vmatprep.subr.bf16.mxu0 %v1047_v0  ;;  %728 = vmatprep.subr.bf16.mxu1 %v1047_v0  ;;  %s1299_s24 = scalar_lea.hbm %s1396_s5, %s710_s8  ;;  %s1308_s29 = scalar_lea.hbm %s1397_s6, %s710_s8 }
  0x74   : > { %s491_s7 = scalar_lea.sflag [#allocation4], %s1276_s20  ;;  %s920_s9 = scalar_lea.vmem %s1301_s18, 128 }
  0x75   : > { %p921_p8 = scmp.ne.s32.totalorder %s1301_s18, %s920_s9  ;;  %p1414_p2 = scmp.ne.s32.totalorder %s1410_s12, 0 }
  0x76   : > { %721 = vmatpush3.bf16.msra.mxu0 %v832_v3  ;;  %729 = vmatpush3.bf16.msra.mxu1 %v833_v4  ;;  %s1049_s28 = smov [#allocation8]  }
  0x77   : > { %p922_p1 = pnand %p921_p8, %p1414_p2  ;;  %s924_s11 = sshll.u32 %s1049_s28, 4  ;;  %s925_s11 = int_to_ptr.vmem [resolvable:$false] %s924_s11 }
  0x78   : > { %s926_s10 = scalar_lea.vmem %s925_s11, 256  ;;  %p927_p3 = scmp.lt.s32.totalorder %s1301_s18, %s925_s11 }
  0x79   : > { %723 = vmatmul.mubr.msk.bf16.vlgmr.msra.gmra.mrb[0].mxu0 %vm360_vm1, %v336_v7  ;;  %731 = vmatmul.mubr.msk.bf16.vlgmr.msra.gmra.mrb[0].mxu1 %vm360_vm1, %v336_v7  ;;  %p923_p10 = pneg %p922_p1  ;;  %p928_p5 = scmp.lt.s32.totalorder %s926_s10, %s920_s9 }
  0x7b   : > { %p929_p9 = por %p928_p5, %p927_p3 }
  0x7d   : > { %p930_p11 = pnand %p929_p9, %p923_p10 }
 0x14c   : > { %v398_v10 = vpop.f32.mrb[0].mxu0  ;;  %v462_v12 = vpop.f32.mrb[0].mxu1 }
 0x14d   : > { %v399_v11 = vadd.f32 %v685_v8, %v398_v10  ;;  %v724_v13 = vpop.f32.mrb[1].mxu0  ;;  %v463_v14 = vadd.f32 %v689_v9, %v462_v12  ;;  %v732_v15 = vpop.f32.mrb[1].mxu1 }
 0x14e   : > { %v401_v16 = vpop.f32.mrb[2].mxu0  ;;  %v465_v19 = vpop.f32.mrb[2].mxu1 }
 0x14f   : > { %v706_v17 = vpack.c.bf16 %v399_v11, %v399_v11  ;;  %v402_v18 = vadd.f32 %v685_v8, %v401_v16  ;;  %v725_v20 = vpop.f32.mrb[3].mxu0  ;;  %v708_v21 = vpack.c.bf16 %v463_v14, %v463_v14  ;;  %v466_v22 = vadd.f32 %v689_v9, %v465_v19  ;;  %v733_v23 = vpop.f32.mrb[3].mxu1 }
 0x151   : > { %478 = vst.msk [vmem:[%s322_s15] sm:$0xf] %vm477_vm2, %v706_v17  ;;  %v707_v24 = vpack.c.bf16 %v402_v18, %v402_v18  ;;  %488 = vst.msk [vmem:[%s329_s14] sm:$0xf] %vm477_vm2, %v708_v21  ;;  %v709_v25 = vpack.c.bf16 %v466_v22, %v466_v22 }
 0x153   : > { %479 = vst.msk [vmem:[%s322_s15 + $0x4] sm:$0xf] %vm477_vm2, %v707_v24  ;;  %489 = vst.msk [vmem:[%s329_s14 + $0x4] sm:$0xf] %vm477_vm2, %v709_v25 }
 0x154   : > { %933 = shalt.err (!%p930_p11)
}
 0x155   : > { %s934_s8 = scalar_lea.hbm %s1299_s24, 128  ;;  %s938_s27 = scalar_lea.hbm %s1396_s5, 256 }
 0x156   : > { %p935_p0 = scmp.ne.s32.totalorder %s1299_s24, %s934_s8  ;;  %p939_p6 = scmp.lt.u32.totalorder %s1299_s24, %s1396_s5 }
 0x157   : > { %p940_p7 = scmp.lt.u32.totalorder %s938_s27, %s934_s8  ;;  %p942_p8 = scmp.lt.u32.totalorder %s934_s8, %s1299_s24 }
 0x158   : > { %p936_p4 = pnand %p935_p0, %p1414_p2 }
 0x159   : > { %p941_p12 = por %p940_p7, %p939_p6 }
 0x15a   : > { %p937_p13 = pneg %p936_p4 }
 0x15b   : > { %p943_p1 = por %p942_p8, %p941_p12 }
 0x15d   : > { %p944_p10 = pnand %p943_p1, %p937_p13 }
 0x15f   : > { %947 = shalt.err (!%p944_p10)
}
 0x160   : > { %s1050_s9 = smov 64   ;;  %s1051_s28 = smov 4  }
 0x161   : > { %744 = dma.vmem_to_hbm [thread:$0]  (%p1414_p2), %s1301_s18, 128, %s1299_s24, %s491_s7, %s1050_s9, %s1050_s9, %s1051_s28  }
 0x162   : > { %s496_s11 = scalar_lea.sflag [#allocation10], %s1276_s20  ;;  %s948_s10 = scalar_lea.vmem %s1310_s17, 128 }
 0x163   : > { %p949_p3 = scmp.ne.s32.totalorder %s1310_s17, %s948_s10  ;;  %s1052_s8 = smov [#allocation9]  }
 0x164   : > { %s952_s15 = sshll.u32 %s1052_s8, 4  ;;  %s953_s15 = int_to_ptr.vmem [resolvable:$false] %s952_s15 }
 0x165   : > { %p950_p5 = pnand %p949_p3, %p1414_p2  ;;  %s954_s14 = scalar_lea.vmem %s953_s15, 256 }
 0x166   : > { %p955_p11 = scmp.lt.s32.totalorder %s1310_s17, %s953_s15  ;;  %p956_p0 = scmp.lt.s32.totalorder %s954_s14, %s948_s10 }
 0x167   : > { %p951_p9 = pneg %p950_p5 }
 0x168   : > { %p957_p4 = por %p956_p0, %p955_p11 }
 0x16a   : > { %p958_p13 = pnand %p957_p4, %p951_p9 }
 0x16c   : > { %961 = shalt.err (!%p958_p13)
}
 0x16d   : > { %s962_s18 = scalar_lea.hbm %s1308_s29, 128  ;;  %s966_s27 = scalar_lea.hbm %s1397_s6, 256 }
 0x16e   : > { %p963_p6 = scmp.ne.s32.totalorder %s1308_s29, %s962_s18  ;;  %p967_p8 = scmp.lt.u32.totalorder %s1308_s29, %s1397_s6 }
 0x16f   : > { %p968_p1 = scmp.lt.u32.totalorder %s966_s27, %s962_s18  ;;  %p970_p3 = scmp.lt.u32.totalorder %s962_s18, %s1308_s29 }
 0x170   : > { %p964_p7 = pnand %p963_p6, %p1414_p2 }
 0x171   : > { %p969_p10 = por %p968_p1, %p967_p8 }
 0x172   : > { %p965_p12 = pneg %p964_p7 }
 0x173   : > { %p971_p5 = por %p970_p3, %p969_p10 }
 0x175   : > { %p972_p9 = pnand %p971_p5, %p965_p12 }
 0x177   : > { %975 = shalt.err (!%p972_p9)
}
 0x178   : > { %745 = dma.vmem_to_hbm [thread:$0]  (%p1414_p2), %s1310_s17, 128, %s1308_s29, %s496_s11, %s1050_s9, %s1050_s9, %s1051_s28  }
 0x179 PF: > { %s1415_s10 = sld [smem:[#allocation15_spill]]  ;;  %s544_s8 = sand.u32 1, %s1018_s21  }
 0x17a   : > { %p1417_p0 = scmp.ge.s32.totalorder %s1038_s26, 2  ;;  %s545_s15 = scalar_lea.sflag [#allocation4], %s544_s8 }
 0x17f   : > { %p1416_p11 = scmp.ne.s32.totalorder %s1415_s10, 0 }
 0x181   : > { %p760_p4 = pnand %p1417_p0, %p1416_p11 }
 0x183   : > { %1009 = dma.done.wait (!%p760_p4), %s545_s15, 128  }
 0x184   : > { %1011 = vsyncadd (!%p760_p4), %s545_s15, 4294967168  ;;  %s554_s12 = scalar_lea.sflag [#allocation10], %s544_s8 }
 0x185   : > { %1013 = dma.done.wait (!%p760_p4), %s554_s12, 128  }
 0x186   : > { %1015 = vsyncadd (!%p760_p4), %s554_s12, 4294967168  ;;  %s27_s26 = sadd.s32 1, %s1038_s26   ;;  %s1418_s21 = smov %s1022_s22 }
 0x187   : > { %p24_p13 = scmp.ge.s32.totalorder %s27_s26, 4   ;;  %s1419_s22 = smov %s1026_s23 }
 0x188   : > { %s1420_s23 = smov %s1230_s13  ;;  %s1421_s24 = smov %s1034_s25 }
 0x189   : > { %s1422_s25 = smov %s1424_s16  ;;  %26 = sbr.rel (!%p24_p13) target bundleno = 9 (0x9), region = 110 }
 0x190   :  { %559 = vsyncpa [#allocation3], 1 }
 0x191   :  { %561 = vsyncpa [#allocation3 + $0x1], 1 }
 0x192   :  { %562 = vsyncpa [#allocation6], 1 }
 0x193   :  { %563 = vsyncpa [#allocation4], 1 }
 0x194   :  { %565 = vsyncpa [#allocation4 + $0x1], 1 }
 0x195   :  { %566 = vsyncpa [#allocation10], 1 }
 0x196   :  { %568 = vsyncpa [#allocation10 + $0x1], 1 }

</bundles_post_ra>
